<compile_context>
chip_gen: v7x
topology: tpu7x:2x2x1
jax: 0.10.0
libtpu: 0.0.40
codegen_flags: <defaults>
</compile_context>

<pallas_src>
from functools import partial

import jax
import jax.numpy as jnp
import numpy as np
from jax.experimental import pallas as pl
from jax.experimental.pallas import tpu as pltpu


def _bilstm_recurrence_kernel(h0_ref, gin_ref, whh_ref, out_ref, h_scr, c_scr):
    """Fused bidirectional LSTM recurrence over one T-block.

    h0_ref : (B, 2H)      f32  initial [h_fwd | h_bwd]
    gin_ref: (Tblk, B, 8H) bf16 precomputed input gates in fused layout
             [i_f|i_b, f_f|f_b, o_f|o_b, g_f|g_b]; the backward-direction
             columns are already time-reversed, so kernel-time t corresponds
             to real time t for fwd and T-1-t for bwd.
    whh_ref: (2H, 8H)     bf16 block-diagonal recurrent weights, same columns.
    out_ref: (Tblk, B, 2H) f32 packed hidden states [h_fwd(t) | h_bwd(T-1-t)].
    h_scr/c_scr: (B, 2H)  f32 state carried across the T grid axis.
    """
    tblk, _, gates_w = gin_ref.shape
    h2 = gates_w // 4                      # 2H: fused per-gate width

    @pl.when(pl.program_id(0) == 0)
    def _():
        h_scr[...] = h0_ref[...]
        c_scr[...] = jnp.zeros_like(c_scr)   # c0 == 0 (initHidden semantics)

    whh = whh_ref[...]                       # stays resident across the grid

    def cell(t, h, c):
        # Single dependent (B,2H)@(2H,8H) MXU matmul on the recurrence chain;
        # both directions share it via the block-diagonal weight.
        gates = gin_ref[t].astype(jnp.float32) + jnp.dot(
            h.astype(jnp.bfloat16), whh, preferred_element_type=jnp.float32)
        if (3 * h2) % 128 == 0:
            # Lane-aligned slices: sigmoid over contiguous [i,f,o] (6H) only,
            # tanh over g (2H) only -> minimal EUP work on the critical path.
            sig = jax.nn.sigmoid(gates[:, :3 * h2])
            g = jnp.tanh(gates[:, 3 * h2:])
        else:
            # Small-H path (toy sizes): full-width passes avoid sub-vreg
            # masked transcendental ops.
            sig = jax.nn.sigmoid(gates)
            g = jnp.tanh(gates)[:, 3 * h2:]
        i = sig[:, 0 * h2:1 * h2]
        f = sig[:, 1 * h2:2 * h2]
        o = sig[:, 2 * h2:3 * h2]
        c_new = f * c + i * g
        h_new = o * jnp.tanh(c_new)
        out_ref[t] = h_new                   # one packed (B, 2H) store per step
        return h_new, c_new

    h = h_scr[...]
    c = c_scr[...]
    if tblk <= 16:
        # Short static block: fully unrolled for LLO scheduling visibility.
        for t in range(tblk):
            h, c = cell(t, h, c)
    else:
        # Longer blocks: bounded live ranges, modest unroll.
        def body(t, carry):
            return cell(t, *carry)
        h, c = jax.lax.fori_loop(0, tblk, body, (h, c), unroll=4)

    h_scr[...] = h
    c_scr[...] = c


@partial(jax.jit, static_argnames=("tblk",))
def extractive_seq_tagging_forward(x, hidden, fused, *, tblk=None):
    """x: (B, T) int32 token ids; hidden: (2, B, H) f32 initial hidden state."""
    emb_table = fused["embedding"]           # (V, H)
    H = emb_table.shape[1]
    B, T = x.shape
    if tblk is None:
        tblk = next(d for d in range(min(T, 128), 0, -1) if T % d == 0)
    assert T % tblk == 0

    # Embedding lookup built directly in seq-first (T, B, H) layout.
    embedded = jnp.take(emb_table, x.T, axis=0).astype(jnp.float32)

    # Hoisted input projection for BOTH directions: one (T*B, H) @ (H, 8H)
    # matmul, columns already in fused gate order [i_f,i_b,f_f,f_b,o_f,o_b,g_f,g_b].
    gin_cat = (embedded.reshape(T * B, H) @ fused["wih_fused"]
               + fused["b_fused"]).reshape(T, B, 4, 2, H)
    gin_fwd = gin_cat[:, :, :, 0]            # (T, B, 4, H), forward time order
    gin_bwd = gin_cat[::-1, :, :, 1]         # backward consumes reversed time
    gin = jnp.stack([gin_fwd, gin_bwd], axis=3).reshape(T, B, 8 * H)
    gin = gin.astype(jnp.bfloat16)           # halve the dominant HBM stream

    h0_fused = jnp.concatenate([hidden[0], hidden[1]], axis=-1).astype(jnp.float32)

    packed = pl.pallas_call(
        _bilstm_recurrence_kernel,
        out_shape=jax.ShapeDtypeStruct((T, B, 2 * H), jnp.float32),
        grid_spec=pltpu.PrefetchScalarGridSpec(
            num_scalar_prefetch=0,
            grid=(T // tblk,),
            in_specs=[
                pl.BlockSpec((B, 2 * H), lambda i: (0, 0)),          # h0
                pl.BlockSpec((tblk, B, 8 * H), lambda i: (i, 0, 0)),  # gin block
                pl.BlockSpec((2 * H, 8 * H), lambda i: (0, 0)),       # whh fused
            ],
            out_specs=pl.BlockSpec((tblk, B, 2 * H), lambda i: (i, 0, 0)),
            scratch_shapes=[pltpu.VMEM((B, 2 * H), jnp.float32),      # h carry
                            pltpu.VMEM((B, 2 * H), jnp.float32)],     # c carry
        ),
        compiler_params=pltpu.CompilerParams(
            dimension_semantics=("arbitrary",),   # sequential: state carried over T
            # Sized to be safe on all generations; at production T/B/H pick
            # tblk so 2 * tblk*B*8H*2B (bf16, double-buffered) + weights +
            # outputs stays well under v7x's 64 MiB physical VMEM.
            vmem_limit_bytes=32 * 1024 * 1024,
        ),
    )(h0_fused, gin, fused["whh_fused"])

    # Un-reverse the backward stream; final Linear(2H -> 2) is tiny and
    # lane-sparse -> leave to XLA.
    hf = packed[:, :, :H]
    hb = packed[::-1, :, H:]
    return hf @ fused["wout_f"] + hb @ fused["wout_b"] + fused["bout"]  # (T, B, 2)


def make_params(key, vocab, hidden_size):
    """Deterministic synthetic parameters in PyTorch nn.LSTM / nn.Linear shapes."""
    H = hidden_size
    ks = jax.random.split(key, 12)
    scale = 1.0 / np.sqrt(H)

    def u(k, shape):
        return jax.random.uniform(k, shape, jnp.float32, -scale, scale)

    return {
        "embedding": jax.random.normal(ks[0], (vocab, H), jnp.float32),  # (V, H)
        # per direction: weight_ih (4H, H), weight_hh (4H, H), biases (4H,)
        "w_ih_f": u(ks[1], (4 * H, H)), "w_hh_f": u(ks[2], (4 * H, H)),
        "b_ih_f": u(ks[3], (4 * H,)),  "b_hh_f": u(ks[4], (4 * H,)),
        "w_ih_b": u(ks[5], (4 * H, H)), "w_hh_b": u(ks[6], (4 * H, H)),
        "b_ih_b": u(ks[7], (4 * H,)),  "b_hh_b": u(ks[8], (4 * H,)),
        # nn.Linear(2H, 2): weight (2, 2H), bias (2,)
        "w_out": u(ks[9], (2, 2 * H)), "b_out": u(ks[10], (2,)),
    }


def prepare_fused_params(raw):
    """Build the fused / pre-transposed operands the kernel wrapper consumes."""
    H = raw["w_hh_f"].shape[1]
    gate_order = (0, 1, 3, 2)   # PyTorch order is (i, f, g, o); fused is (i, f, o, g)

    wih_f_t, wih_b_t = raw["w_ih_f"].T, raw["w_ih_b"].T      # (H, 4H)
    whh_f_t, whh_b_t = raw["w_hh_f"].T, raw["w_hh_b"].T      # (H, 4H)
    b_f = raw["b_ih_f"] + raw["b_hh_f"]
    b_b = raw["b_ih_b"] + raw["b_hh_b"]

    zero = jnp.zeros((H, H), jnp.float32)
    wih_cols, b_cols, whh_blocks = [], [], []
    for gi in gate_order:
        sl = slice(gi * H, (gi + 1) * H)
        wih_cols += [wih_f_t[:, sl], wih_b_t[:, sl]]
        b_cols += [b_f[sl], b_b[sl]]
        top = jnp.concatenate([whh_f_t[:, sl], zero], axis=1)   # (H, 2H)
        bot = jnp.concatenate([zero, whh_b_t[:, sl]], axis=1)   # (H, 2H)
        whh_blocks.append(jnp.concatenate([top, bot], axis=0))  # (2H, 2H)

    w_out_t = raw["w_out"].T                                    # (2H, 2)
    return {
        "embedding": raw["embedding"],
        "wih_fused": jnp.concatenate(wih_cols, axis=1),                 # (H, 8H)
        "b_fused": jnp.concatenate(b_cols).reshape(1, 8 * H),           # (1, 8H)
        "whh_fused": jnp.concatenate(whh_blocks, axis=1).astype(jnp.bfloat16),  # (2H, 8H)
        "wout_f": w_out_t[:H, :], "wout_b": w_out_t[H:, :],             # (H, 2)
        "bout": raw["b_out"].reshape(1, 2),
    }


def _reference_forward(x, hidden, raw):
    """Pure-JAX reference of the same BiLSTM forward (PyTorch gate semantics),
    mirroring the kernel's compute dtypes (bf16 gin / recurrent weights,
    f32 accumulation and gate math)."""
    emb = jnp.take(raw["embedding"], x.T, axis=0).astype(jnp.float32)
    T, B, H = emb.shape

    def run_dir(w_ih, w_hh, b_ih, b_hh, h0, reverse):
        wih_t = w_ih.T
        whh_t = w_hh.T.astype(jnp.bfloat16)
        b = (b_ih + b_hh).reshape(1, -1)
        h, c = h0, jnp.zeros_like(h0)
        outs = [None] * T
        ts = range(T - 1, -1, -1) if reverse else range(T)
        for t in ts:
            gin = (emb[t] @ wih_t + b).astype(jnp.bfloat16).astype(jnp.float32)
            g = gin + jnp.dot(h.astype(jnp.bfloat16), whh_t,
                              preferred_element_type=jnp.float32)
            i = jax.nn.sigmoid(g[:, 0 * H:1 * H])
            f = jax.nn.sigmoid(g[:, 1 * H:2 * H])
            gg = jnp.tanh(g[:, 2 * H:3 * H])
            o = jax.nn.sigmoid(g[:, 3 * H:4 * H])
            c = f * c + i * gg
            h = o * jnp.tanh(c)
            outs[t] = h
        return jnp.stack(outs)

    hf = run_dir(raw["w_ih_f"], raw["w_hh_f"], raw["b_ih_f"], raw["b_hh_f"],
                 hidden[0], False)
    hb = run_dir(raw["w_ih_b"], raw["w_hh_b"], raw["b_ih_b"], raw["b_hh_b"],
                 hidden[1], True)
    return jnp.concatenate([hf, hb], axis=-1) @ raw["w_out"].T + raw["b_out"]


if __name__ == "__main__":
    key = jax.random.PRNGKey(0)
    k_params, k_x = jax.random.split(key)

    VOCAB = 64
    HIDDEN = 32   # embedding dim == LSTM hidden size (as in the module)
    BATCH = 2
    SEQ = 8

    raw_params = make_params(k_params, VOCAB, HIDDEN)
    fused_params = prepare_fused_params(raw_params)

    x = jax.random.randint(k_x, (BATCH, SEQ), 0, VOCAB, dtype=jnp.int32)
    hidden = jnp.zeros((2, BATCH, HIDDEN), jnp.float32)  # initHidden(batch)

    # tblk=4 -> grid of 2 T-blocks, exercising the carried-state grid path.
    out = extractive_seq_tagging_forward(x, hidden, fused_params, tblk=4)
    out = jax.block_until_ready(out)
    assert out.shape == (SEQ, BATCH, 2) and out.dtype == jnp.float32

    ref = _reference_forward(x, hidden, raw_params)
    np.testing.assert_allclose(np.asarray(out), np.asarray(ref),
                               atol=2e-3, rtol=2e-3)

    print("KERNEL_OK")
</pallas_src>

<mosaic_0001>
module attributes {stable_mosaic.version = 11 : i64} {
  func.func @_bilstm_recurrence_kernel(%arg0: i32, %arg1: memref<2x64xf32, #tpu.memory_space<vmem>>, %arg2: memref<4x2x256xbf16, #tpu.memory_space<vmem>>, %arg3: memref<64x256xbf16, #tpu.memory_space<vmem>>, %arg4: memref<4x2x64xf32, #tpu.memory_space<vmem>>, %arg5: memref<2x64xf32, #tpu.memory_space<vmem>>, %arg6: memref<2x64xf32, #tpu.memory_space<vmem>>) attributes {dimension_semantics = [#tpu.dimension_semantics<arbitrary>], iteration_bounds = array<i64: 2>, scalar_prefetch = 0 : i64, scratch_operands = 2 : i64, tpu.core_type = #tpu.core_type<tc>, window_params = [{pipeline_mode = #tpu.pipeline_mode<synchronous>, transform_indices = @transform_0, window_bounds = array<i64: 2, 64>}, {transform_indices = @transform_1, window_bounds = array<i64: 4, 2, 256>}, {pipeline_mode = #tpu.pipeline_mode<synchronous>, transform_indices = @transform_2, window_bounds = array<i64: 64, 256>}, {transform_indices = @transform_3, window_bounds = array<i64: 4, 2, 64>}]} {
    %c0_i32 = arith.constant 0 : i32
    %0 = arith.cmpi eq, %arg0, %c0_i32 : i32
    %1 = arith.extui %0 : i1 to i32
    %c0_i32_0 = arith.constant 0 : i32
    %2 = arith.cmpi ne, %1, %c0_i32_0 : i32
    scf.if %2 {
      %c0_38 = arith.constant 0 : index
      %c0_39 = arith.constant 0 : index
      %104 = vector.load %arg1[%c0_38, %c0_39] : memref<2x64xf32, #tpu.memory_space<vmem>>, vector<2x64xf32>
      %c0_40 = arith.constant 0 : index
      %c0_41 = arith.constant 0 : index
      %105 = vector.load %arg5[%c0_40, %c0_41] : memref<2x64xf32, #tpu.memory_space<vmem>>, vector<2x64xf32>
      tpu.vector_store %arg5[%c0_40, %c0_41], %104 {strides = array<i32>} : memref<2x64xf32, #tpu.memory_space<vmem>>, vector<2x64xf32>,
      %cst_42 = arith.constant 0.000000e+00 : f32
      %106 = vector.broadcast %cst_42 : f32 to vector<2x64xf32>
      %c0_43 = arith.constant 0 : index
      %c0_44 = arith.constant 0 : index
      %107 = vector.load %arg6[%c0_43, %c0_44] : memref<2x64xf32, #tpu.memory_space<vmem>>, vector<2x64xf32>
      tpu.vector_store %arg6[%c0_43, %c0_44], %106 {strides = array<i32>} : memref<2x64xf32, #tpu.memory_space<vmem>>, vector<2x64xf32>,
    } else {
    }
    %c0 = arith.constant 0 : index
    %c0_1 = arith.constant 0 : index
    %3 = vector.load %arg3[%c0, %c0_1] : memref<64x256xbf16, #tpu.memory_space<vmem>>, vector<64x256xbf16>
    %c0_2 = arith.constant 0 : index
    %c0_3 = arith.constant 0 : index
    %4 = vector.load %arg5[%c0_2, %c0_3] : memref<2x64xf32, #tpu.memory_space<vmem>>, vector<2x64xf32>
    %c0_4 = arith.constant 0 : index
    %c0_5 = arith.constant 0 : index
    %5 = vector.load %arg6[%c0_4, %c0_5] : memref<2x64xf32, #tpu.memory_space<vmem>>, vector<2x64xf32>
    %c0_6 = arith.constant 0 : index
    %c0_7 = arith.constant 0 : index
    %c0_8 = arith.constant 0 : index
    %6 = vector.load %arg2[%c0_6, %c0_7, %c0_8] : memref<4x2x256xbf16, #tpu.memory_space<vmem>>, vector<1x2x256xbf16>
    %7 = vector.shape_cast %6 : vector<1x2x256xbf16> to vector<2x256xbf16>
    %8 = arith.extf %7 : vector<2x256xbf16> to vector<2x256xf32>
    %9 = arith.truncf %4 : vector<2x64xf32> to vector<2x64xbf16>
    %cst = arith.constant dense<0.000000e+00> : vector<2x256xf32>
    %10 = tpu.matmul %9, %3, %cst {dimension_numbers = #tpu.dot_dimension_numbers<[1], [0], [0], [1], [0, 0, 1, 1], [], []>} : vector<2x64xbf16>, vector<64x256xbf16>, vector<2x256xf32> -> vector<2x256xf32>
    %11 = arith.addf %8, %10 : vector<2x256xf32>
    %12 = arith.negf %11 : vector<2x256xf32>
    %13 = math.exp %12 : vector<2x256xf32>
    %cst_9 = arith.constant 1.000000e+00 : f32
    %14 = vector.broadcast %cst_9 : f32 to vector<2x256xf32>
    %15 = arith.addf %14, %13 : vector<2x256xf32>
    %16 = arith.divf %14, %15 : vector<2x256xf32>
    %17 = math.tanh %11 : vector<2x256xf32>
    %18 = vector.extract_strided_slice %17 {offsets = [0, 192], sizes = [2, 64], strides = [1, 1]} : vector<2x256xf32> to vector<2x64xf32>
    %19 = vector.extract_strided_slice %16 {offsets = [0, 0], sizes = [2, 64], strides = [1, 1]} : vector<2x256xf32> to vector<2x64xf32>
    %20 = vector.extract_strided_slice %16 {offsets = [0, 64], sizes = [2, 64], strides = [1, 1]} : vector<2x256xf32> to vector<2x64xf32>
    %21 = vector.extract_strided_slice %16 {offsets = [0, 128], sizes = [2, 64], strides = [1, 1]} : vector<2x256xf32> to vector<2x64xf32>
    %22 = arith.mulf %20, %5 : vector<2x64xf32>
    %23 = arith.mulf %19, %18 : vector<2x64xf32>
    %24 = arith.addf %22, %23 : vector<2x64xf32>
    %25 = math.tanh %24 : vector<2x64xf32>
    %26 = arith.mulf %21, %25 : vector<2x64xf32>
    %c0_10 = arith.constant 0 : index
    %c0_11 = arith.constant 0 : index
    %c0_12 = arith.constant 0 : index
    %27 = vector.load %arg4[%c0_10, %c0_11, %c0_12] : memref<4x2x64xf32, #tpu.memory_space<vmem>>, vector<1x2x64xf32>
    %28 = vector.shape_cast %27 : vector<1x2x64xf32> to vector<2x64xf32>
    %29 = vector.shape_cast %26 : vector<2x64xf32> to vector<1x2x64xf32>
    tpu.vector_store %arg4[%c0_10, %c0_11, %c0_12], %29 {strides = array<i32>} : memref<4x2x64xf32, #tpu.memory_space<vmem>>, vector<1x2x64xf32>,
    %c1 = arith.constant 1 : index
    %c0_13 = arith.constant 0 : index
    %c0_14 = arith.constant 0 : index
    %30 = vector.load %arg2[%c1, %c0_13, %c0_14] : memref<4x2x256xbf16, #tpu.memory_space<vmem>>, vector<1x2x256xbf16>
    %31 = vector.shape_cast %30 : vector<1x2x256xbf16> to vector<2x256xbf16>
    %32 = arith.extf %31 : vector<2x256xbf16> to vector<2x256xf32>
    %33 = arith.truncf %26 : vector<2x64xf32> to vector<2x64xbf16>
    %cst_15 = arith.constant dense<0.000000e+00> : vector<2x256xf32>
    %34 = tpu.matmul %33, %3, %cst_15 {dimension_numbers = #tpu.dot_dimension_numbers<[1], [0], [0], [1], [0, 0, 1, 1], [], []>} : vector<2x64xbf16>, vector<64x256xbf16>, vector<2x256xf32> -> vector<2x256xf32>
    %35 = arith.addf %32, %34 : vector<2x256xf32>
    %36 = arith.negf %35 : vector<2x256xf32>
    %37 = math.exp %36 : vector<2x256xf32>
    %cst_16 = arith.constant 1.000000e+00 : f32
    %38 = vector.broadcast %cst_16 : f32 to vector<2x256xf32>
    %39 = arith.addf %38, %37 : vector<2x256xf32>
    %40 = arith.divf %38, %39 : vector<2x256xf32>
    %41 = math.tanh %35 : vector<2x256xf32>
    %42 = vector.extract_strided_slice %41 {offsets = [0, 192], sizes = [2, 64], strides = [1, 1]} : vector<2x256xf32> to vector<2x64xf32>
    %43 = vector.extract_strided_slice %40 {offsets = [0, 0], sizes = [2, 64], strides = [1, 1]} : vector<2x256xf32> to vector<2x64xf32>
    %44 = vector.extract_strided_slice %40 {offsets = [0, 64], sizes = [2, 64], strides = [1, 1]} : vector<2x256xf32> to vector<2x64xf32>
    %45 = vector.extract_strided_slice %40 {offsets = [0, 128], sizes = [2, 64], strides = [1, 1]} : vector<2x256xf32> to vector<2x64xf32>
    %46 = arith.mulf %44, %24 : vector<2x64xf32>
    %47 = arith.mulf %43, %42 : vector<2x64xf32>
    %48 = arith.addf %46, %47 : vector<2x64xf32>
    %49 = math.tanh %48 : vector<2x64xf32>
    %50 = arith.mulf %45, %49 : vector<2x64xf32>
    %c1_17 = arith.constant 1 : index
    %c0_18 = arith.constant 0 : index
    %c0_19 = arith.constant 0 : index
    %51 = vector.load %arg4[%c1_17, %c0_18, %c0_19] : memref<4x2x64xf32, #tpu.memory_space<vmem>>, vector<1x2x64xf32>
    %52 = vector.shape_cast %51 : vector<1x2x64xf32> to vector<2x64xf32>
    %53 = vector.shape_cast %50 : vector<2x64xf32> to vector<1x2x64xf32>
    tpu.vector_store %arg4[%c1_17, %c0_18, %c0_19], %53 {strides = array<i32>} : memref<4x2x64xf32, #tpu.memory_space<vmem>>, vector<1x2x64xf32>,
    %c2 = arith.constant 2 : index
    %c0_20 = arith.constant 0 : index
    %c0_21 = arith.constant 0 : index
    %54 = vector.load %arg2[%c2, %c0_20, %c0_21] : memref<4x2x256xbf16, #tpu.memory_space<vmem>>, vector<1x2x256xbf16>
    %55 = vector.shape_cast %54 : vector<1x2x256xbf16> to vector<2x256xbf16>
    %56 = arith.extf %55 : vector<2x256xbf16> to vector<2x256xf32>
    %57 = arith.truncf %50 : vector<2x64xf32> to vector<2x64xbf16>
    %cst_22 = arith.constant dense<0.000000e+00> : vector<2x256xf32>
    %58 = tpu.matmul %57, %3, %cst_22 {dimension_numbers = #tpu.dot_dimension_numbers<[1], [0], [0], [1], [0, 0, 1, 1], [], []>} : vector<2x64xbf16>, vector<64x256xbf16>, vector<2x256xf32> -> vector<2x256xf32>
    %59 = arith.addf %56, %58 : vector<2x256xf32>
    %60 = arith.negf %59 : vector<2x256xf32>
    %61 = math.exp %60 : vector<2x256xf32>
    %cst_23 = arith.constant 1.000000e+00 : f32
    %62 = vector.broadcast %cst_23 : f32 to vector<2x256xf32>
    %63 = arith.addf %62, %61 : vector<2x256xf32>
    %64 = arith.divf %62, %63 : vector<2x256xf32>
    %65 = math.tanh %59 : vector<2x256xf32>
    %66 = vector.extract_strided_slice %65 {offsets = [0, 192], sizes = [2, 64], strides = [1, 1]} : vector<2x256xf32> to vector<2x64xf32>
    %67 = vector.extract_strided_slice %64 {offsets = [0, 0], sizes = [2, 64], strides = [1, 1]} : vector<2x256xf32> to vector<2x64xf32>
    %68 = vector.extract_strided_slice %64 {offsets = [0, 64], sizes = [2, 64], strides = [1, 1]} : vector<2x256xf32> to vector<2x64xf32>
    %69 = vector.extract_strided_slice %64 {offsets = [0, 128], sizes = [2, 64], strides = [1, 1]} : vector<2x256xf32> to vector<2x64xf32>
    %70 = arith.mulf %68, %48 : vector<2x64xf32>
    %71 = arith.mulf %67, %66 : vector<2x64xf32>
    %72 = arith.addf %70, %71 : vector<2x64xf32>
    %73 = math.tanh %72 : vector<2x64xf32>
    %74 = arith.mulf %69, %73 : vector<2x64xf32>
    %c2_24 = arith.constant 2 : index
    %c0_25 = arith.constant 0 : index
    %c0_26 = arith.constant 0 : index
    %75 = vector.load %arg4[%c2_24, %c0_25, %c0_26] : memref<4x2x64xf32, #tpu.memory_space<vmem>>, vector<1x2x64xf32>
    %76 = vector.shape_cast %75 : vector<1x2x64xf32> to vector<2x64xf32>
    %77 = vector.shape_cast %74 : vector<2x64xf32> to vector<1x2x64xf32>
    tpu.vector_store %arg4[%c2_24, %c0_25, %c0_26], %77 {strides = array<i32>} : memref<4x2x64xf32, #tpu.memory_space<vmem>>, vector<1x2x64xf32>,
    %c3 = arith.constant 3 : index
    %c0_27 = arith.constant 0 : index
    %c0_28 = arith.constant 0 : index
    %78 = vector.load %arg2[%c3, %c0_27, %c0_28] : memref<4x2x256xbf16, #tpu.memory_space<vmem>>, vector<1x2x256xbf16>
    %79 = vector.shape_cast %78 : vector<1x2x256xbf16> to vector<2x256xbf16>
    %80 = arith.extf %79 : vector<2x256xbf16> to vector<2x256xf32>
    %81 = arith.truncf %74 : vector<2x64xf32> to vector<2x64xbf16>
    %cst_29 = arith.constant dense<0.000000e+00> : vector<2x256xf32>
    %82 = tpu.matmul %81, %3, %cst_29 {dimension_numbers = #tpu.dot_dimension_numbers<[1], [0], [0], [1], [0, 0, 1, 1], [], []>} : vector<2x64xbf16>, vector<64x256xbf16>, vector<2x256xf32> -> vector<2x256xf32>
    %83 = arith.addf %80, %82 : vector<2x256xf32>
    %84 = arith.negf %83 : vector<2x256xf32>
    %85 = math.exp %84 : vector<2x256xf32>
    %cst_30 = arith.constant 1.000000e+00 : f32
    %86 = vector.broadcast %cst_30 : f32 to vector<2x256xf32>
    %87 = arith.addf %86, %85 : vector<2x256xf32>
    %88 = arith.divf %86, %87 : vector<2x256xf32>
    %89 = math.tanh %83 : vector<2x256xf32>
    %90 = vector.extract_strided_slice %89 {offsets = [0, 192], sizes = [2, 64], strides = [1, 1]} : vector<2x256xf32> to vector<2x64xf32>
    %91 = vector.extract_strided_slice %88 {offsets = [0, 0], sizes = [2, 64], strides = [1, 1]} : vector<2x256xf32> to vector<2x64xf32>
    %92 = vector.extract_strided_slice %88 {offsets = [0, 64], sizes = [2, 64], strides = [1, 1]} : vector<2x256xf32> to vector<2x64xf32>
    %93 = vector.extract_strided_slice %88 {offsets = [0, 128], sizes = [2, 64], strides = [1, 1]} : vector<2x256xf32> to vector<2x64xf32>
    %94 = arith.mulf %92, %72 : vector<2x64xf32>
    %95 = arith.mulf %91, %90 : vector<2x64xf32>
    %96 = arith.addf %94, %95 : vector<2x64xf32>
    %97 = math.tanh %96 : vector<2x64xf32>
    %98 = arith.mulf %93, %97 : vector<2x64xf32>
    %c3_31 = arith.constant 3 : index
    %c0_32 = arith.constant 0 : index
    %c0_33 = arith.constant 0 : index
    %99 = vector.load %arg4[%c3_31, %c0_32, %c0_33] : memref<4x2x64xf32, #tpu.memory_space<vmem>>, vector<1x2x64xf32>
    %100 = vector.shape_cast %99 : vector<1x2x64xf32> to vector<2x64xf32>
    %101 = vector.shape_cast %98 : vector<2x64xf32> to vector<1x2x64xf32>
    tpu.vector_store %arg4[%c3_31, %c0_32, %c0_33], %101 {strides = array<i32>} : memref<4x2x64xf32, #tpu.memory_space<vmem>>, vector<1x2x64xf32>,
    %c0_34 = arith.constant 0 : index
    %c0_35 = arith.constant 0 : index
    %102 = vector.load %arg5[%c0_34, %c0_35] : memref<2x64xf32, #tpu.memory_space<vmem>>, vector<2x64xf32>
    tpu.vector_store %arg5[%c0_34, %c0_35], %98 {strides = array<i32>} : memref<2x64xf32, #tpu.memory_space<vmem>>, vector<2x64xf32>,
    %c0_36 = arith.constant 0 : index
    %c0_37 = arith.constant 0 : index
    %103 = vector.load %arg6[%c0_36, %c0_37] : memref<2x64xf32, #tpu.memory_space<vmem>>, vector<2x64xf32>
    tpu.vector_store %arg6[%c0_36, %c0_37], %96 {strides = array<i32>} : memref<2x64xf32, #tpu.memory_space<vmem>>, vector<2x64xf32>,
    return
  }
  func.func @transform_0(%arg0: i32) -> (i32, i32) {
    %c0_i32 = arith.constant 0 : i32
    %c0_i32_0 = arith.constant 0 : i32
    %c0_i32_1 = arith.constant 0 : i32
    return %c0_i32, %c0_i32_0 : i32, i32
  }
  func.func @transform_1(%arg0: i32) -> (i32, i32, i32) {
    %c0_i32 = arith.constant 0 : i32
    %c0_i32_0 = arith.constant 0 : i32
    %c0_i32_1 = arith.constant 0 : i32
    return %arg0, %c0_i32, %c0_i32_0 : i32, i32, i32
  }
  func.func @transform_2(%arg0: i32) -> (i32, i32) {
    %c0_i32 = arith.constant 0 : i32
    %c0_i32_0 = arith.constant 0 : i32
    %c0_i32_1 = arith.constant 0 : i32
    return %c0_i32, %c0_i32_0 : i32, i32
  }
  func.func @transform_3(%arg0: i32) -> (i32, i32, i32) {
    %c0_i32 = arith.constant 0 : i32
    %c0_i32_0 = arith.constant 0 : i32
    %c0_i32_1 = arith.constant 0 : i32
    return %arg0, %c0_i32, %c0_i32_0 : i32, i32, i32
  }
}

</mosaic_0001>

<bundles_post_ra>
// kernel: extractive_seq_tagging_forward.1
= control target key start
LH: loop header
LB: loop body
LE: loop exit
PB: predicated region body
PF: predicated region fallthrough
CT: control target
= control target key end

     0   :  { %s796_s12 = smov 0   ;;  %s929_s0 = inlined_call_operand.vmem [shape: f32[2,64], index: 0, kind: input, shape index: {}]   ;;  %s930_s1 = inlined_call_operand.vmem [shape: bf16[8,2,256], index: 1, kind: input, shape index: {}]   ;;  %s931_s2 = inlined_call_operand.vmem [shape: bf16[64,256], index: 2, kind: input, shape index: {}]   ;;  %s932_s3 = inlined_call_operand.vmem [shape: f32[8,2,64], index: 3, kind: output, shape index: {}]  }
   0x1 LB: > { %s673_s13 = sadd.s32 4294967295, %s770_s12   ;;  %p677_p0 = scmp.ge.s32.totalorder %s770_s12, 1  ;;  %s770_s12 = sphi %s796_s12, %s13_s12  }
   0x2   : > { %p138_p1 = scmp.lt.s32.totalorder %s770_s12, 3 }
   0x4   : > { %p139_p2 = pnand %p677_p0, %p138_p1 }
   0x5   : > { %s678_s14 = sshll.u32 (!%p139_p2), %s673_s13, 2  ;;  %p682_p4 = scmp.ne.s32.totalorder (!%p139_p2), %s673_s13, 0 }
   0x6   : > { %142 = sbr.rel (%p139_p2) target bundleno = 2421 (0x975), region = 32  ;;  %p163_p3 = scmp.lt.s32.totalorder (!%p139_p2), %s678_s14, 7 }
   0xd   : > { %s934_s14 = smov (!%p163_p3, %s678_s14), 7  ;;  %178 = sbr.rel (%p682_p4) target bundleno = 20 (0x14), region = 36 }
   0xe   : > { %s679_s15 = sshll.u32 %s934_s14, 1  ;;  %v179_v0 = vld [vmem:[%s929_s0] sm:$0x3] (!%p682_p4)  ;;  %vm180_vm0 = vcmask (!%p682_p4), 517120   ;;  %v772_v1 = vmov (!%p682_p4), 0.0  }
   0xf   : > { %s807_s18 = scalar_lea.vmem %s930_s1, %s679_s15  ;;  %s812_s21 = scalar_lea.vmem %s932_s3, %s679_s15  ;;  %181 = vst.msk [vmem:[#allocation2] sm:$0x3] (!%p682_p4), %vm180_vm0, %v179_v0  ;;  %182 = vst.msk [vmem:[#allocation3] sm:$0x3] (!%p682_p4), %vm180_vm0, %v772_v1 }
  0x14 PF: > { %v720_v2 = vld [vmem:[%s931_s2 + $0x4] ss:$8 sps:$4 sm:$0xff]   ;;  %v823_v3 = vld [vmem:[%s931_s2] ss:$8 sps:$4 sm:$0xff]   ;;  %v773_v4 = vmov 0   ;;  %vm236_vm1 = vcmask 523264   ;;  %v287_v15 = vlaneseq }
  0x15   : > { %272 = vmatprep.mubr.bf16.mxu0 %v773_v4  ;;  %373 = vmatprep.mubr.bf16.mxu1 %v773_v4  ;;  %v830_v5 = vld [vmem:[%s931_s2 + $0x14] ss:$8 sps:$4 sm:$0xff]   ;;  %v836_v6 = vld [vmem:[%s931_s2 + $0x10] ss:$8 sps:$4 sm:$0xff]   ;;  %v843_v7 = vld [vmem:[%s931_s2 + $0x24] ss:$8 sps:$4 sm:$0xff]  }
  0x16   : > { %240 = vmatprep.subr.bf16.mxu0 %v720_v2  ;;  %341 = vmatprep.subr.bf16.mxu1 %v720_v2  ;;  %v850_v8 = vld [vmem:[%s931_s2 + $0x20] ss:$8 sps:$4 sm:$0xff]   ;;  %v857_v9 = vld [vmem:[%s931_s2 + $0x34] ss:$8 sps:$4 sm:$0xff]   ;;  %v864_v10 = vld [vmem:[%s931_s2 + $0x30] ss:$8 sps:$4 sm:$0xff]  }
  0x17   : > { %241 = vmatpush1.bf16.msra.mxu0 %v823_v3  ;;  %342 = vmatpush1.bf16.msra.mxu1 %v823_v3  ;;  %v191_v11 = vld [vmem:[#allocation2] sm:$0x3]  ;;  %v774_v13 = vmov 1983009808   ;;  %v288_v17 = vshrl.u32 %v287_v15, 7  ;;  %s775_s14 = smov 64  }
  0x18   : > { %242 = vmatprep.subr.bf16.mxu0 %v830_v5  ;;  %343 = vmatprep.subr.bf16.mxu1 %v830_v5  ;;  %v195_v12 = vpack.c.bf16 %v191_v11, %v191_v11  ;;  %v285_v14 = vunpack.c.l.s4 %v774_v13  ;;  %v193_v18 = vld [vmem:[%s807_s18] sm:$0x3]  ;;  %v693_v29 = vld.sshfl [vmem:[#allocation3] sm:$0x3 pattern:$0x76325410] }
  0x19   : > { %v194_v22 = vunpack.c.l.bf16 %v193_v18  ;;  %vm332_vm2 = vcmask 517120   ;;  %v694_v46 = vld [vmem:[%s807_s18 + $0x2] sm:$0x3] }
  0x1a   : > { %v286_v16 = vunpack.c.0.s8 %v285_v14  ;;  %v336_v49 = vunpack.c.l.bf16 %v694_v46 }
  0x1b   : > { %243 = vmatpush1.bf16.msra.mxu0 %v836_v6  ;;  %344 = vmatpush1.bf16.msra.mxu1 %v836_v6 }
  0x1c   : > { %244 = vmatprep.subr.bf16.mxu0 %v843_v7  ;;  %345 = vmatprep.subr.bf16.mxu1 %v843_v7  ;;  %v881_v20 = vsub.s32 %v286_v16, %v288_v17 }
  0x1f   : > { %245 = vmatpush1.bf16.msra.mxu0 %v850_v8  ;;  %346 = vmatpush1.bf16.msra.mxu1 %v850_v8 }
  0x20   : > { %246 = vmatprep.subr.bf16.mxu0 %v857_v9  ;;  %347 = vmatprep.subr.bf16.mxu1 %v857_v9 }
  0x23   : > { %247 = vmatpush1.bf16.msra.mxu0 %v864_v10  ;;  %348 = vmatpush1.bf16.msra.mxu1 %v864_v10 }
  0x24   : > { %431 = vmatprep.subr.bf16.mxu0 %v720_v2  ;;  %521 = vmatprep.subr.bf16.mxu1 %v720_v2 }
  0x26   : > { %691 = vmatmul.mubr.msk.bf16.vlgmr.msra.gmra.mrb[0].mxu0 %vm236_vm1, %v195_v12 }
  0x27   : > { %432 = vmatpush1.bf16.msra.mxu0 %v823_v3  ;;  %463 = vmatprep.mubr.bf16.mxu0 %v773_v4 }
  0x28   : > { %433 = vmatprep.subr.bf16.mxu0 %v830_v5 }
  0x2b   : > { %434 = vmatpush1.bf16.msra.mxu0 %v836_v6 }
  0x2c   : > { %435 = vmatprep.subr.bf16.mxu0 %v843_v7 }
  0x2f   : > { %436 = vmatpush1.bf16.msra.mxu0 %v850_v8 }
  0x30   : > { %437 = vmatprep.subr.bf16.mxu0 %v857_v9 }
  0x33   : > { %438 = vmatpush1.bf16.msra.mxu0 %v864_v10 }
  0xf9   : > { %v274_v19 = vpop.f32.mrb[0].mxu0 }
  0xfa   : > { %v276_v21 = vpop.f32.mrb[1].mxu0 }
  0xfb   : > { %v283_v23 = vcombine.low %v274_v19, %v276_v21  ;;  %v278_v24 = vpop.f32.mrb[2].mxu0 }
  0xfc   : > { %v279_v25 = vpop.f32.mrb[3].mxu0 }
  0xfd   : > { %v290_v26 = vrot.slane %v283_v23, %v881_v20 }
  0xff   : > { %v292_v27 = vadd.f32 %v290_v26, %v194_v22 }
 0x101   : > { %732 = vtanh.f32 %v292_v27  ;;  %v692_v30 = vmul.f32 -1.442695, %v292_v27 }
 0x103   : > { %734 = vpow2.f32 %v692_v30 }
 0x10b   : > { %v733_v28 = vpop.eup %732 }
 0x10c   : > { %313 = vrot.lane.b32.xlu0 %v733_v28, %s775_s14 }
 0x10d   : > { %v735_v31 = vpop.eup %734 }
 0x10e   : > { %v296_v32 = vadd.f32 1.0, %v735_v31 }
 0x110   : > { %308 = vrot.lane.b32.xlu0 %v693_v29, %s775_s14  ;;  %736 = vrcp.f32 %v296_v32 }
 0x11a   : > { %v737_v35 = vpop.eup %736 }
 0x11b   : > { %v325_v42 = vrot.slane %v737_v35, 2 }
 0x17e   : > { %v314_v33 = vpop.permute.xlu0 %313 }
 0x17f   : > { %v315_v34 = vrot.slane %v314_v33, 2  ;;  %v702_v33 = vld [vmem:[%s807_s18 + $0x6] sm:$0x3] }
 0x181   : > { %v317_v36 = vmul.f32 %v737_v35, %v315_v34 }
 0x182   : > { %v309_v37 = vpop.permute.xlu0 %308 }
 0x183   : > { %319 = vrot.lane.b32.xlu1 %v317_v36, %s775_s14  ;;  %v311_v38 = vmul.f32 %v737_v35, %v309_v37  ;;  %v516_v36 = vunpack.c.l.bf16 %v702_v33 }
 0x1f5   : > { %v320_v39 = vpop.permute.xlu1 %319 }
 0x1f6   : > { %v322_v40 = vadd.f32 %v320_v39, %v311_v38 }
 0x1f8   : > { %738 = vtanh.f32 %v322_v40 }
 0x202   : > { %v739_v41 = vpop.eup %738 }
 0x203   : > { %328 = vrot.lane.b32.xlu1 %v739_v41, %s775_s14 }
 0x275   : > { %v329_v43 = vpop.permute.xlu1 %328 }
 0x276   : > { %v331_v44 = vmul.f32 %v329_v43, %v325_v42 }
 0x278   : > { %333 = vst.msk [vmem:[%s812_s21] sm:$0x3] %vm332_vm2, %v331_v44  ;;  %v337_v45 = vpack.c.bf16 %v331_v44, %v331_v44 }
 0x27a   : > { %695 = vmatmul.mubr.msk.bf16.vlgmr.msra.gmra.mrb[0].mxu1 %vm236_vm1, %v337_v45 }
 0x27b   : > { %522 = vmatpush1.bf16.msra.mxu1 %v823_v3  ;;  %553 = vmatprep.mubr.bf16.mxu1 %v773_v4 }
 0x27c   : > { %523 = vmatprep.subr.bf16.mxu1 %v830_v5 }
 0x27f   : > { %524 = vmatpush1.bf16.msra.mxu1 %v836_v6 }
 0x280   : > { %525 = vmatprep.subr.bf16.mxu1 %v843_v7  ;;  %v698_v7 = vld [vmem:[%s807_s18 + $0x4] sm:$0x3] }
 0x283   : > { %526 = vmatpush1.bf16.msra.mxu1 %v850_v8 }
 0x284   : > { %527 = vmatprep.subr.bf16.mxu1 %v857_v9 }
 0x287   : > { %528 = vmatpush1.bf16.msra.mxu1 %v864_v10  ;;  %v426_v10 = vunpack.c.l.bf16 %v698_v7 }
 0x34d   : > { %v375_v47 = vpop.f32.mrb[0].mxu1 }
 0x34e   : > { %v377_v48 = vpop.f32.mrb[1].mxu1 }
 0x34f   : > { %v384_v50 = vcombine.low %v375_v47, %v377_v48  ;;  %v379_v51 = vpop.f32.mrb[2].mxu1 }
 0x350   : > { %v380_v52 = vpop.f32.mrb[3].mxu1 }
 0x351   : > { %v391_v53 = vrot.slane %v384_v50, %v881_v20 }
 0x353   : > { %v393_v54 = vadd.f32 %v391_v53, %v336_v49 }
 0x355   : > { %740 = vtanh.f32 %v393_v54  ;;  %v696_v56 = vmul.f32 -1.442695, %v393_v54 }
 0x357   : > { %742 = vpow2.f32 %v696_v56 }
 0x35f   : > { %v741_v55 = vpop.eup %740 }
 0x360   : > { %403 = vrot.lane.b32.xlu0 %v741_v55, %s775_s14 }
 0x361   : > { %v743_v57 = vpop.eup %742 }
 0x362   : > { %v397_v58 = vadd.f32 1.0, %v743_v57 }
 0x364   : > { %744 = vrcp.f32 %v397_v58 }
 0x36e   : > { %v745_v61 = vpop.eup %744 }
 0x36f   : > { %v401_v63 = vmul.f32 %v745_v61, %v322_v40  ;;  %v415_v3 = vrot.slane %v745_v61, 2 }
 0x3d2   : > { %v404_v59 = vpop.permute.xlu0 %403 }
 0x3d3   : > { %v405_v60 = vrot.slane %v404_v59, 2 }
 0x3d5   : > { %v407_v62 = vmul.f32 %v745_v61, %v405_v60 }
 0x3d7   : > { %409 = vrot.lane.b32.xlu1 %v407_v62, %s775_s14 }
 0x449   : > { %v410_v0 = vpop.permute.xlu1 %409 }
 0x44a   : > { %v412_v1 = vadd.f32 %v410_v0, %v401_v63 }
 0x44c   : > { %746 = vtanh.f32 %v412_v1 }
 0x456   : > { %v747_v2 = vpop.eup %746 }
 0x457   : > { %418 = vrot.lane.b32.xlu0 %v747_v2, %s775_s14 }
 0x4c9   : > { %v419_v4 = vpop.permute.xlu0 %418 }
 0x4ca   : > { %v421_v5 = vmul.f32 %v419_v4, %v415_v3 }
 0x4cc   : > { %697 = vst.msk [vmem:[%s812_s21 + $0x2] sm:$0x3] %vm332_vm2, %v421_v5  ;;  %v427_v6 = vpack.c.bf16 %v421_v5, %v421_v5 }
 0x4ce   : > { %699 = vmatmul.mubr.msk.bf16.vlgmr.msra.gmra.mrb[4].mxu0 %vm236_vm1, %v427_v6 }
 0x5a1   : > { %v465_v8 = vpop.f32.mrb[4].mxu0 }
 0x5a2   : > { %v467_v9 = vpop.f32.mrb[5].mxu0 }
 0x5a3   : > { %v474_v11 = vcombine.low %v465_v8, %v467_v9  ;;  %v469_v12 = vpop.f32.mrb[6].mxu0 }
 0x5a4   : > { %v470_v13 = vpop.f32.mrb[7].mxu0 }
 0x5a5   : > { %v481_v14 = vrot.slane %v474_v11, %v881_v20 }
 0x5a7   : > { %v483_v15 = vadd.f32 %v481_v14, %v426_v10 }
 0x5a9   : > { %748 = vtanh.f32 %v483_v15  ;;  %v700_v17 = vmul.f32 -1.442695, %v483_v15 }
 0x5ab   : > { %750 = vpow2.f32 %v700_v17 }
 0x5b3   : > { %v749_v16 = vpop.eup %748 }
 0x5b4   : > { %493 = vrot.lane.b32.xlu1 %v749_v16, %s775_s14 }
 0x5b5   : > { %v751_v18 = vpop.eup %750 }
 0x5b6   : > { %v487_v19 = vadd.f32 1.0, %v751_v18 }
 0x5b8   : > { %752 = vrcp.f32 %v487_v19 }
 0x5c2   : > { %v753_v23 = vpop.eup %752 }
 0x5c3   : > { %v491_v25 = vmul.f32 %v753_v23, %v412_v1  ;;  %v505_v29 = vrot.slane %v753_v23, 2 }
 0x626   : > { %v494_v21 = vpop.permute.xlu1 %493 }
 0x627   : > { %v495_v22 = vrot.slane %v494_v21, 2 }
 0x629   : > { %v497_v24 = vmul.f32 %v753_v23, %v495_v22 }
 0x62b   : > { %499 = vrot.lane.b32.xlu0 %v497_v24, %s775_s14 }
 0x69d   : > { %v500_v26 = vpop.permute.xlu0 %499 }
 0x69e   : > { %v502_v27 = vadd.f32 %v500_v26, %v491_v25 }
 0x6a0   : > { %754 = vtanh.f32 %v502_v27 }
 0x6aa   : > { %v755_v28 = vpop.eup %754 }
 0x6ab   : > { %508 = vrot.lane.b32.xlu1 %v755_v28, %s775_s14 }
 0x71d   : > { %v509_v30 = vpop.permute.xlu1 %508 }
 0x71e   : > { %v511_v31 = vmul.f32 %v509_v30, %v505_v29 }
 0x720   : > { %701 = vst.msk [vmem:[%s812_s21 + $0x4] sm:$0x3] %vm332_vm2, %v511_v31  ;;  %v517_v32 = vpack.c.bf16 %v511_v31, %v511_v31 }
 0x722   : > { %703 = vmatmul.mubr.msk.bf16.vlgmr.msra.gmra.mrb[4].mxu1 %vm236_vm1, %v517_v32 }
 0x7f5   : > { %v555_v34 = vpop.f32.mrb[4].mxu1 }
 0x7f6   : > { %v557_v35 = vpop.f32.mrb[5].mxu1 }
 0x7f7   : > { %v564_v37 = vcombine.low %v555_v34, %v557_v35  ;;  %v559_v38 = vpop.f32.mrb[6].mxu1 }
 0x7f8   : > { %v560_v39 = vpop.f32.mrb[7].mxu1 }
 0x7f9   : > { %v571_v40 = vrot.slane %v564_v37, %v881_v20 }
 0x7fb   : > { %v573_v41 = vadd.f32 %v571_v40, %v516_v36 }
 0x7fd   : > { %756 = vtanh.f32 %v573_v41  ;;  %v704_v43 = vmul.f32 -1.442695, %v573_v41 }
 0x7ff   : > { %758 = vpow2.f32 %v704_v43 }
 0x807   : > { %v757_v42 = vpop.eup %756 }
 0x808   : > { %583 = vrot.lane.b32.xlu0 %v757_v42, %s775_s14 }
 0x809   : > { %v759_v44 = vpop.eup %758 }
 0x80a   : > { %v577_v45 = vadd.f32 1.0, %v759_v44 }
 0x80c   : > { %760 = vrcp.f32 %v577_v45 }
 0x816   : > { %v761_v48 = vpop.eup %760 }
 0x817   : > { %v581_v50 = vmul.f32 %v761_v48, %v502_v27  ;;  %v595_v56 = vrot.slane %v761_v48, 2 }
 0x87a   : > { %v584_v46 = vpop.permute.xlu0 %583 }
 0x87b   : > { %v585_v47 = vrot.slane %v584_v46, 2 }
 0x87d   : > { %v587_v49 = vmul.f32 %v761_v48, %v585_v47 }
 0x87f   : > { %589 = vrot.lane.b32.xlu1 %v587_v49, %s775_s14 }
 0x8f1   : > { %v590_v51 = vpop.permute.xlu1 %589 }
 0x8f2   : > { %v592_v52 = vadd.f32 %v590_v51, %v581_v50 }
 0x8f4   : > { %762 = vtanh.f32 %v592_v52  ;;  %v612_v53 = vrot.slane %v592_v52, %v881_v20 }
 0x8f6   : > { %613 = vrot.lane.b32.xlu1 %v612_v53, %s775_s14 }
 0x8fe   : > { %v763_v54 = vpop.eup %762 }
 0x8ff   : > { %598 = vrot.lane.b32.xlu0 %v763_v54, %s775_s14 }
 0x968   : > { %v614_v55 = vpop.permute.xlu1 %613 }
 0x969   : > { %616 = vst.msk [vmem:[#allocation3] sm:$0x3] %vm332_vm2, %v614_v55 }
 0x971   : > { %v599_v57 = vpop.permute.xlu0 %598 }
 0x972   : > { %v601_v58 = vmul.f32 %v599_v57, %v595_v56 }
 0x974   : > { %705 = vst.msk [vmem:[%s812_s21 + $0x6] sm:$0x3] %vm332_vm2, %v601_v58  ;;  %604 = vst.msk [vmem:[#allocation2] sm:$0x3] %vm332_vm2, %v601_v58 }
 0x975 PF: > { %s13_s12 = sadd.s32 1, %s770_s12  }
 0x976   : > { %p10_p5 = scmp.ge.s32.totalorder %s13_s12, 4  }
 0x978   :  { %12 = sbr.rel (!%p10_p5) target bundleno = 1 (0x1), region = 72 }

</bundles_post_ra>
